<compile_context>
chip_gen: v7x
topology: tpu7x:2x2x1
jax: 0.10.0
libtpu: 0.0.40
codegen_flags: <defaults>
</compile_context>

<pallas_src>
import jax
import jax.numpy as jnp
from jax.experimental import pallas as pl
from jax.experimental.pallas import tpu as pltpu

FEAT = 1792   # EfficientNet-WideSE-B4 feature width = head input dim
NPAD = 8      # folded head vectors padded to a full sublane group (rows 0/1 real)


def _pool_heads_kernel(x_ref, vt_ref, c_ref, out_ref):
    """One grid step = `bt` batch samples.

    x_ref  : [bt, C, HW]    bf16 backbone features (NCHW with HW flattened)
    vt_ref : [NPAD, C]      bf16 folded head vectors (row 0 = head1, row 1 = head2)
    c_ref  : [NPAD, 1]      f32 folded scalar offsets
    out_ref: [1, NPAD, bt]  f32; row 0 = dx, row 1 = dy (columns = samples)
    """
    bt = x_ref.shape[0]
    inv_hw = 1.0 / x_ref.shape[-1]                    # static
    vt = vt_ref[...]                                  # (NPAD, C)
    cols = []
    for b in range(bt):                               # static unroll over the block
        # MXU does the 1792-deep contraction; only a tiny [NPAD, HW] lane-reduce
        # (== global average pool fused with both heads) is left for the XLU.
        part = jnp.dot(vt, x_ref[b], preferred_element_type=jnp.float32)  # (NPAD, HW)
        cols.append(jnp.sum(part, axis=-1, keepdims=True))                # (NPAD, 1)
    pooled = cols[0] if bt == 1 else jnp.concatenate(cols, axis=1)        # (NPAD, bt)
    out_ref[0] = pooled * inv_hw + c_ref[...]


def _pick_batch_block(B, C, hw, itemsize):
    """Largest batch block whose double-buffered feature stream stays ~<=8 MiB
    (v5e's 16 MiB scoped-VMEM default is the tightest budget), while keeping
    >=2 grid steps so v7x's two TensorCores both get work."""
    lane_hw = -(-hw // 128) * 128                     # VMEM lane padding of the HW axis
    per_sample = C * lane_hw * itemsize
    bt = max(1, (8 * 1024 * 1024) // (2 * per_sample))
    bt = min(bt, 8)
    if B >= 2:
        bt = min(bt, -(-B // 2))                      # keep at least 2 grid steps
    return int(max(1, min(bt, B)))


def player_location_heads(feat_nchw, folded, *, batch_block=None):
    """feat_nchw: [B, 1792, H, W] backbone features (bf16 preferred).
    folded: dict from fold_head_params(). Returns (dx, dy), each [B, 1]."""
    B, C, H, W = feat_nchw.shape
    assert C == FEAT
    hw = H * W
    x = feat_nchw.reshape(B, C, hw)                   # NCHW consumed directly, no transpose
    # TODO(synk): ideally the backbone emits bf16 activations so this cast is a no-op.
    x = x.astype(jnp.bfloat16)

    bt = batch_block or _pick_batch_block(B, C, hw, 2)
    nblk = -(-B // bt)

    cost = pl.CostEstimate(
        flops=2 * B * NPAD * C * hw,
        transcendentals=0,
        bytes_accessed=B * C * hw * 2 + NPAD * C * 2 + NPAD * 4 + nblk * bt * NPAD * 4,
    )

    out = pl.pallas_call(
        _pool_heads_kernel,
        out_shape=jax.ShapeDtypeStruct((nblk, NPAD, bt), jnp.float32),
        grid_spec=pltpu.PrefetchScalarGridSpec(
            num_scalar_prefetch=0,
            grid=(nblk,),
            in_specs=[
                pl.BlockSpec((bt, C, hw), lambda b: (b, 0, 0)),   # features (bt samples/step)
                pl.BlockSpec((NPAD, C), lambda b: (0, 0)),        # folded head vectors
                pl.BlockSpec((NPAD, 1), lambda b: (0, 0)),        # folded offsets
            ],
            out_specs=pl.BlockSpec((1, NPAD, bt), lambda b: (b, 0, 0)),
        ),
        compiler_params=pltpu.CompilerParams(
            dimension_semantics=("parallel",)),
        cost_estimate=cost,
    )(x, folded["vt"], folded["c"])

    # Tiny (nblk, 8, bt) fix-up in plain XLA: put samples on rows, heads on columns.
    out = out.transpose(0, 2, 1).reshape(nblk * bt, NPAD)[:B]     # (B, NPAD)
    dx = out[:, 0:1]                                              # (B, 1)
    dy = out[:, 1:2]
    return dx, dy


def make_params(key):
    """Synthetic weights matching the head shapes in __init__.
    Stored as (in, out) so forward is x @ W (== PyTorch x @ weight.T)."""
    ks = jax.random.split(key, 8)
    s = 0.02
    return {
        "w1a": s * jax.random.normal(ks[0], (FEAT, FEAT), jnp.float32),
        "b1a": s * jax.random.normal(ks[1], (FEAT,), jnp.float32),
        "w1b": s * jax.random.normal(ks[2], (FEAT,), jnp.float32),
        "b1b": s * jax.random.normal(ks[3], (), jnp.float32),
        "w2a": s * jax.random.normal(ks[4], (FEAT, FEAT), jnp.float32),
        "b2a": s * jax.random.normal(ks[5], (FEAT,), jnp.float32),
        "w2b": s * jax.random.normal(ks[6], (FEAT,), jnp.float32),
        "b2b": s * jax.random.normal(ks[7], (), jnp.float32),
    }


def fold_head_params(p):
    """Fold Linear(1792,1792) -> Linear(1792,1) into one 1792-vector + scalar per
    head (exact: no nonlinearity between the Linears).  Run ONCE at load time."""
    hi = jax.lax.Precision.HIGHEST
    v1 = jnp.dot(p["w1a"], p["w1b"], precision=hi)                    # (FEAT,)
    c1 = jnp.dot(p["b1a"], p["w1b"], precision=hi) + p["b1b"]         # scalar
    v2 = jnp.dot(p["w2a"], p["w2b"], precision=hi)
    c2 = jnp.dot(p["b2a"], p["w2b"], precision=hi) + p["b2b"]
    vt = jnp.zeros((NPAD, FEAT), jnp.float32).at[0].set(v1).at[1].set(v2)
    c = jnp.zeros((NPAD, 1), jnp.float32).at[0, 0].set(c1).at[1, 0].set(c2)
    return {"vt": vt.astype(jnp.bfloat16), "c": c}


def reference(feat_nchw_f32, p):
    """Unfused f32 reference matching the PyTorch module math exactly."""
    pooled = feat_nchw_f32.mean(axis=(2, 3))          # AdaptiveAvgPool2d(1) + flatten
    h1 = pooled @ p["w1a"] + p["b1a"]
    dx = h1 @ p["w1b"][:, None] + p["b1b"]
    h2 = pooled @ p["w2a"] + p["b2a"]
    dy = h2 @ p["w2b"][:, None] + p["b2b"]
    return dx, dy


if __name__ == "__main__":
    key = jax.random.PRNGKey(0)
    k_feat, k_par = jax.random.split(key)

    # Backbone feature map (output of self.model with classifier=Identity):
    # small spatial extent, NCHW, channels fixed at 1792 by the head dims.
    B, H, W = 2, 8, 8
    feat = jax.random.normal(k_feat, (B, FEAT, H, W), jnp.float32).astype(jnp.bfloat16)
    params = make_params(k_par)
    folded = fold_head_params(params)                # one-time, outside the hot path

    dx, dy = jax.jit(player_location_heads)(feat, folded)
    jax.block_until_ready((dx, dy))

    dx_ref, dy_ref = reference(feat.astype(jnp.float32), params)
    assert dx.shape == (B, 1) and dy.shape == (B, 1)
    assert jnp.allclose(dx, dx_ref, rtol=5e-3, atol=5e-3)
    assert jnp.allclose(dy, dy_ref, rtol=5e-3, atol=5e-3)

    print("KERNEL_OK")
</pallas_src>

<mosaic_0001>
module attributes {stable_mosaic.version = 11 : i64} {
  func.func @_pool_heads_kernel(%arg0: i32, %arg1: memref<1x1792x64xbf16, #tpu.memory_space<vmem>>, %arg2: memref<8x1792xbf16, #tpu.memory_space<vmem>>, %arg3: memref<8x1xf32, #tpu.memory_space<vmem>>, %arg4: memref<1x8x1xf32, #tpu.memory_space<vmem>>) attributes {dimension_semantics = [#tpu.dimension_semantics<parallel>], iteration_bounds = array<i64: 2>, scalar_prefetch = 0 : i64, scratch_operands = 0 : i64, tpu.core_type = #tpu.core_type<tc>, window_params = [{transform_indices = @transform_0, window_bounds = array<i64: 1, 1792, 64>}, {pipeline_mode = #tpu.pipeline_mode<synchronous>, transform_indices = @transform_1, window_bounds = array<i64: 8, 1792>}, {pipeline_mode = #tpu.pipeline_mode<synchronous>, transform_indices = @transform_2, window_bounds = array<i64: 8, 1>}, {transform_indices = @transform_3, window_bounds = array<i64: 1, 8, 1>}]} {
    %c0 = arith.constant 0 : index
    %c0_0 = arith.constant 0 : index
    %0 = vector.load %arg2[%c0, %c0_0] : memref<8x1792xbf16, #tpu.memory_space<vmem>>, vector<8x1792xbf16>
    %c0_1 = arith.constant 0 : index
    %c0_2 = arith.constant 0 : index
    %c0_3 = arith.constant 0 : index
    %1 = vector.load %arg1[%c0_1, %c0_2, %c0_3] : memref<1x1792x64xbf16, #tpu.memory_space<vmem>>, vector<1x1792x64xbf16>
    %2 = vector.shape_cast %1 : vector<1x1792x64xbf16> to vector<1792x64xbf16>
    %cst = arith.constant dense<0.000000e+00> : vector<8x64xf32>
    %3 = tpu.matmul %0, %2, %cst {dimension_numbers = #tpu.dot_dimension_numbers<[1], [0], [0], [1], [0, 0, 1, 1], [], []>} : vector<8x1792xbf16>, vector<1792x64xbf16>, vector<8x64xf32> -> vector<8x64xf32>
    %cst_4 = arith.constant dense<0.000000e+00> : vector<8xf32>
    %4 = vector.multi_reduction <add>, %3, %cst_4 [1] : vector<8x64xf32> to vector<8xf32>
    %5 = vector.shape_cast %4 : vector<8xf32> to vector<8x1xf32>
    %cst_5 = arith.constant 1.562500e-02 : f32
    %6 = vector.broadcast %cst_5 : f32 to vector<8x1xf32>
    %7 = arith.mulf %5, %6 : vector<8x1xf32>
    %c0_6 = arith.constant 0 : index
    %c0_7 = arith.constant 0 : index
    %8 = vector.load %arg3[%c0_6, %c0_7] : memref<8x1xf32, #tpu.memory_space<vmem>>, vector<8x1xf32>
    %9 = arith.addf %7, %8 : vector<8x1xf32>
    %c0_8 = arith.constant 0 : index
    %c0_9 = arith.constant 0 : index
    %c0_10 = arith.constant 0 : index
    %10 = vector.load %arg4[%c0_8, %c0_9, %c0_10] : memref<1x8x1xf32, #tpu.memory_space<vmem>>, vector<1x8x1xf32>
    %11 = vector.shape_cast %10 : vector<1x8x1xf32> to vector<8x1xf32>
    %12 = vector.shape_cast %9 : vector<8x1xf32> to vector<1x8x1xf32>
    tpu.vector_store %arg4[%c0_8, %c0_9, %c0_10], %12 {strides = array<i32>} : memref<1x8x1xf32, #tpu.memory_space<vmem>>, vector<1x8x1xf32>,
    return
  }
  func.func @transform_0(%arg0: i32) -> (i32, i32, i32) {
    %c0_i32 = arith.constant 0 : i32
    %c0_i32_0 = arith.constant 0 : i32
    %c0_i32_1 = arith.constant 0 : i32
    return %arg0, %c0_i32, %c0_i32_0 : i32, i32, i32
  }
  func.func @transform_1(%arg0: i32) -> (i32, i32) {
    %c0_i32 = arith.constant 0 : i32
    %c0_i32_0 = arith.constant 0 : i32
    %c0_i32_1 = arith.constant 0 : i32
    return %c0_i32, %c0_i32_0 : i32, i32
  }
  func.func @transform_2(%arg0: i32) -> (i32, i32) {
    %c0_i32 = arith.constant 0 : i32
    %c0_i32_0 = arith.constant 0 : i32
    %c0_i32_1 = arith.constant 0 : i32
    return %c0_i32, %c0_i32_0 : i32, i32
  }
  func.func @transform_3(%arg0: i32) -> (i32, i32, i32) {
    %c0_i32 = arith.constant 0 : i32
    %c0_i32_0 = arith.constant 0 : i32
    %c0_i32_1 = arith.constant 0 : i32
    return %arg0, %c0_i32, %c0_i32_0 : i32, i32, i32
  }
}

</mosaic_0001>

<bundles_post_ra>
// kernel: player_location_heads.1
= control target key start
LH: loop header
LB: loop body
LE: loop exit
PB: predicated region body
PF: predicated region fallthrough
CT: control target
= control target key end

     0   :  { %s1916_s12 = smov 0   ;;  %s2111_s0 = inlined_call_operand.vmem [shape: bf16[2,1792,64], index: 0, kind: input, shape index: {}]   ;;  %s2112_s1 = inlined_call_operand.vmem [shape: bf16[8,1792], index: 1, kind: input, shape index: {}]   ;;  %s2113_s2 = inlined_call_operand.vmem [shape: f32[8,1], index: 2, kind: input, shape index: {}]   ;;  %s2114_s3 = inlined_call_operand.vmem [shape: f32[2,8,1], index: 3, kind: output, shape index: {}]  }
   0x1 LB: > { %s1464_s13 = sadd.s32 4294967295, %s1894_s12   ;;  %p1468_p0 = scmp.ge.s32.totalorder %s1894_s12, 1  ;;  %s1894_s12 = sphi %s1916_s12, %s13_s12  }
   0x2   : > { %p137_p1 = scmp.lt.s32.totalorder %s1894_s12, 3 }
   0x4   : > { %p138_p2 = pnand %p1468_p0, %p137_p1 }
   0x5   : > { %p160_p3 = scmp.lt.s32.totalorder (!%p138_p2), %s1464_s13, 1  ;;  %v1927_v0 = vld [vmem:[%s2112_s1] sm:$0xff] (!%p138_p2)  ;;  %v1932_v1 = vld [vmem:[%s2112_s1 + $0x8] sm:$0xff] (!%p138_p2)  ;;  %v1978_v33 = vld [vmem:[%s2112_s1 + $0x10] sm:$0xff] (!%p138_p2)  ;;  %vm1402_vm0 = vcmask (!%p138_p2), 523264   ;;  %vm1409_vm1 = vcmask (!%p138_p2), 7168  }
   0x6   : > { %141 = sbr.rel (%p138_p2) target bundleno = 512 (0x200), region = 32  ;;  %v1472_v2 = vcombine.high (!%p138_p2), %v1927_v0, %v1927_v0  ;;  %v1474_v3 = vcombine.high (!%p138_p2), %v1932_v1, %v1932_v1  ;;  %v1985_v36 = vld [vmem:[%s2112_s1 + $0x18] sm:$0xff] (!%p138_p2)  ;;  %v1471_v38 = vcombine.low (!%p138_p2), %v1927_v0, %v1927_v0  ;;  %v1473_v39 = vcombine.low (!%p138_p2), %v1932_v1, %v1932_v1 }
   0x7   : > { %v1476_v42 = vcombine.high (!%p138_p2), %v1978_v33, %v1978_v33  ;;  %v1478_v45 = vcombine.high (!%p138_p2), %v1985_v36, %v1985_v36 }
   0x8   : > { %1154 = vmatprep.mubr.bf16.mxu0 (!%p138_p2), %v1472_v2  ;;  %1194 = vmatprep.mubr.bf16.mxu1 (!%p138_p2), %v1474_v3 }
   0xd   : > { %s2116_s13 = smov (!%p160_p3, %s1464_s13), 1 }
   0xe   : > { %s1753_s18 = smul.u32 896, %s2116_s13  ;;  %s1470_s5 = sshll.u32 %s2116_s13, 3 }
   0xf   : > { %s168_s10 = scalar_lea.vmem %s2114_s3, %s1470_s5 }
  0x10   : > { %s1944_s21 = scalar_lea.vmem %s2111_s0, %s1753_s18 }
  0x11   : > { %v1762_v4 = vld [vmem:[%s1944_s21 + $0x40] sm:$0xff]   ;;  %v1766_v8 = vld [vmem:[%s1944_s21 + $0x48] sm:$0xff]   ;;  %v1770_v12 = vld [vmem:[%s1944_s21 + $0x50] sm:$0xff]  }
  0x12   : > { %v1763_v5 = vld [vmem:[%s1944_s21 + $0xc0] sm:$0xff]   ;;  %1599 = vmatprep.subr.bf16.mxu0 %v1762_v4  ;;  %v1767_v9 = vld [vmem:[%s1944_s21 + $0xc8] sm:$0xff]   ;;  %v1771_v13 = vld [vmem:[%s1944_s21 + $0xd0] sm:$0xff]  }
  0x13   : > { %v1764_v6 = vld [vmem:[%s1944_s21] sm:$0xff]   ;;  %1621 = vmatprep.subr.bf16.mxu1 %v1763_v5  ;;  %v1768_v10 = vld [vmem:[%s1944_s21 + $0x8] sm:$0xff]   ;;  %v1772_v14 = vld [vmem:[%s1944_s21 + $0x10] sm:$0xff]  }
  0x14   : > { %v1765_v7 = vld [vmem:[%s1944_s21 + $0x80] sm:$0xff]   ;;  %1600 = vmatpush3.bf16.msra.mxu0 %v1764_v6  ;;  %v1769_v11 = vld [vmem:[%s1944_s21 + $0x88] sm:$0xff]   ;;  %v1773_v15 = vld [vmem:[%s1944_s21 + $0x90] sm:$0xff]  }
  0x15   : > { %1622 = vmatpush3.bf16.msra.mxu1 %v1765_v7  ;;  %1601 = vmatprep.subr.bf16.mxu0 %v1766_v8  ;;  %v1774_v16 = vld [vmem:[%s1944_s21 + $0x58] sm:$0xff]   ;;  %v1778_v20 = vld [vmem:[%s1944_s21 + $0x60] sm:$0xff]   ;;  %v1782_v24 = vld [vmem:[%s1944_s21 + $0x68] sm:$0xff]  }
  0x16   : > { %1623 = vmatprep.subr.bf16.mxu1 %v1767_v9  ;;  %v1775_v17 = vld [vmem:[%s1944_s21 + $0xd8] sm:$0xff]   ;;  %v1779_v21 = vld [vmem:[%s1944_s21 + $0xe0] sm:$0xff]   ;;  %v1783_v25 = vld [vmem:[%s1944_s21 + $0xe8] sm:$0xff]  }
  0x17   : > { %v1776_v18 = vld [vmem:[%s1944_s21 + $0x18] sm:$0xff]   ;;  %v1780_v22 = vld [vmem:[%s1944_s21 + $0x20] sm:$0xff]   ;;  %v1784_v26 = vld [vmem:[%s1944_s21 + $0x28] sm:$0xff]  }
  0x18   : > { %1602 = vmatpush3.bf16.msra.mxu0 %v1768_v10  ;;  %v1777_v19 = vld [vmem:[%s1944_s21 + $0x98] sm:$0xff]   ;;  %v1781_v23 = vld [vmem:[%s1944_s21 + $0xa0] sm:$0xff]   ;;  %v1785_v27 = vld [vmem:[%s1944_s21 + $0xa8] sm:$0xff]  }
  0x19   : > { %1624 = vmatpush3.bf16.msra.mxu1 %v1769_v11  ;;  %1603 = vmatprep.subr.bf16.mxu0 %v1770_v12  ;;  %v1786_v28 = vld [vmem:[%s1944_s21 + $0x70] sm:$0xff]   ;;  %v1790_v32 = vld [vmem:[%s1944_s21 + $0x78] sm:$0xff]   ;;  %v1798_v40 = vld [vmem:[%s1944_s21 + $0x140] sm:$0xff]   ;;  %v1475_v11 = vcombine.low %v1978_v33, %v1978_v33 }
  0x1a   : > { %1625 = vmatprep.subr.bf16.mxu1 %v1771_v13  ;;  %v1787_v29 = vld [vmem:[%s1944_s21 + $0xf0] sm:$0xff]   ;;  %v1791_v34 = vld [vmem:[%s1944_s21 + $0xf8] sm:$0xff]   ;;  %v1799_v41 = vld [vmem:[%s1944_s21 + $0x100] sm:$0xff]  }
  0x1b   : > { %v1788_v30 = vld [vmem:[%s1944_s21 + $0x30] sm:$0xff]   ;;  %v1792_v35 = vld [vmem:[%s1944_s21 + $0x38] sm:$0xff]   ;;  %v1800_v43 = vld [vmem:[%s1944_s21 + $0x1c0] sm:$0xff]  }
  0x1c   : > { %1604 = vmatpush3.bf16.msra.mxu0 %v1772_v14  ;;  %v1789_v31 = vld [vmem:[%s1944_s21 + $0xb0] sm:$0xff]   ;;  %v1793_v37 = vld [vmem:[%s1944_s21 + $0xb8] sm:$0xff]   ;;  %v1801_v44 = vld [vmem:[%s1944_s21 + $0x180] sm:$0xff]   ;;  %v1477_v14 = vcombine.low %v1985_v36, %v1985_v36 }
  0x1d   : > { %1626 = vmatpush3.bf16.msra.mxu1 %v1773_v15  ;;  %1605 = vmatprep.subr.bf16.mxu0 %v1774_v16  ;;  %v1802_v46 = vld [vmem:[%s1944_s21 + $0x148] sm:$0xff]   ;;  %v1806_v50 = vld [vmem:[%s1944_s21 + $0x150] sm:$0xff]   ;;  %v1810_v54 = vld [vmem:[%s1944_s21 + $0x158] sm:$0xff]  }
  0x1e   : > { %1627 = vmatprep.subr.bf16.mxu1 %v1775_v17  ;;  %v1803_v47 = vld [vmem:[%s1944_s21 + $0x108] sm:$0xff]   ;;  %v1807_v51 = vld [vmem:[%s1944_s21 + $0x110] sm:$0xff]   ;;  %v1811_v55 = vld [vmem:[%s1944_s21 + $0x118] sm:$0xff]  }
  0x1f   : > { %v1804_v48 = vld [vmem:[%s1944_s21 + $0x1c8] sm:$0xff]   ;;  %v1808_v52 = vld [vmem:[%s1944_s21 + $0x1d0] sm:$0xff]   ;;  %v1812_v56 = vld [vmem:[%s1944_s21 + $0x1d8] sm:$0xff]  }
  0x20   : > { %1606 = vmatpush3.bf16.msra.mxu0 %v1776_v18  ;;  %v1805_v49 = vld [vmem:[%s1944_s21 + $0x188] sm:$0xff]   ;;  %v1809_v53 = vld [vmem:[%s1944_s21 + $0x190] sm:$0xff]   ;;  %v1813_v57 = vld [vmem:[%s1944_s21 + $0x198] sm:$0xff]  }
  0x21   : > { %1628 = vmatpush3.bf16.msra.mxu1 %v1777_v19  ;;  %1607 = vmatprep.subr.bf16.mxu0 %v1778_v20  ;;  %v1814_v58 = vld [vmem:[%s1944_s21 + $0x160] sm:$0xff]   ;;  %v1818_v62 = vld [vmem:[%s1944_s21 + $0x168] sm:$0xff]   ;;  %v1822_v2 = vld [vmem:[%s1944_s21 + $0x170] sm:$0xff]  }
  0x22   : > { %1629 = vmatprep.subr.bf16.mxu1 %v1779_v21  ;;  %v1815_v59 = vld [vmem:[%s1944_s21 + $0x120] sm:$0xff]   ;;  %v1819_v63 = vld [vmem:[%s1944_s21 + $0x128] sm:$0xff]   ;;  %v1823_v3 = vld [vmem:[%s1944_s21 + $0x130] sm:$0xff]  }
  0x23   : > { %v1816_v60 = vld [vmem:[%s1944_s21 + $0x1e0] sm:$0xff]   ;;  %v1820_v0 = vld [vmem:[%s1944_s21 + $0x1e8] sm:$0xff]   ;;  %v1824_v4 = vld [vmem:[%s1944_s21 + $0x1f0] sm:$0xff]  }
  0x24   : > { %1608 = vmatpush3.bf16.msra.mxu0 %v1780_v22  ;;  %v1817_v61 = vld [vmem:[%s1944_s21 + $0x1a0] sm:$0xff]   ;;  %v1821_v1 = vld [vmem:[%s1944_s21 + $0x1a8] sm:$0xff]   ;;  %v1825_v5 = vld [vmem:[%s1944_s21 + $0x1b0] sm:$0xff]  }
  0x25   : > { %1630 = vmatpush3.bf16.msra.mxu1 %v1781_v23  ;;  %1609 = vmatprep.subr.bf16.mxu0 %v1782_v24  ;;  %v1826_v6 = vld [vmem:[%s1944_s21 + $0x178] sm:$0xff]   ;;  %v2028_v7 = vld [vmem:[%s2112_s1 + $0x20] sm:$0xff]  ;;  %v2035_v10 = vld [vmem:[%s2112_s1 + $0x28] sm:$0xff] }
  0x26   : > { %1631 = vmatprep.subr.bf16.mxu1 %v1783_v25  ;;  %v1827_v8 = vld [vmem:[%s1944_s21 + $0x138] sm:$0xff]   ;;  %v1832_v13 = vld [vmem:[%s1944_s21 + $0x240] sm:$0xff]   ;;  %v1480_v16 = vcombine.high %v2028_v7, %v2028_v7  ;;  %v1482_v19 = vcombine.high %v2035_v10, %v2035_v10  ;;  %v1838_v20 = vld [vmem:[%s1944_s21 + $0x248] sm:$0xff]  }
  0x27   : > { %v1828_v9 = vld [vmem:[%s1944_s21 + $0x1f8] sm:$0xff]   ;;  %v1835_v15 = vld [vmem:[%s1944_s21 + $0x200] sm:$0xff]   ;;  %v1839_v21 = vld [vmem:[%s1944_s21 + $0x208] sm:$0xff]  }
  0x28   : > { %1610 = vmatpush3.bf16.msra.mxu0 %v1784_v26  ;;  %v1831_v12 = vld [vmem:[%s1944_s21 + $0x1b8] sm:$0xff]   ;;  %v1836_v17 = vld [vmem:[%s1944_s21 + $0x2c0] sm:$0xff]   ;;  %v1840_v22 = vld [vmem:[%s1944_s21 + $0x2c8] sm:$0xff]  }
  0x29   : > { %1632 = vmatpush3.bf16.msra.mxu1 %v1785_v27  ;;  %1611 = vmatprep.subr.bf16.mxu0 %v1786_v28  ;;  %v1837_v18 = vld [vmem:[%s1944_s21 + $0x280] sm:$0xff]   ;;  %v1841_v23 = vld [vmem:[%s1944_s21 + $0x288] sm:$0xff]   ;;  %v1842_v24 = vld [vmem:[%s1944_s21 + $0x250] sm:$0xff]  }
  0x2a   : > { %1633 = vmatprep.subr.bf16.mxu1 %v1787_v29  ;;  %v1843_v25 = vld [vmem:[%s1944_s21 + $0x210] sm:$0xff]   ;;  %v1846_v28 = vld [vmem:[%s1944_s21 + $0x258] sm:$0xff]   ;;  %v1851_v33 = vld [vmem:[%s1944_s21 + $0x220] sm:$0xff]  }
  0x2b   : > { %v1844_v26 = vld [vmem:[%s1944_s21 + $0x2d0] sm:$0xff]   ;;  %v1847_v29 = vld [vmem:[%s1944_s21 + $0x218] sm:$0xff]   ;;  %v1854_v36 = vld [vmem:[%s1944_s21 + $0x268] sm:$0xff]  }
  0x2c   : > { %1612 = vmatpush3.bf16.msra.mxu0 %v1788_v30  ;;  %v1845_v27 = vld [vmem:[%s1944_s21 + $0x290] sm:$0xff]   ;;  %v1848_v30 = vld [vmem:[%s1944_s21 + $0x2d8] sm:$0xff]  }
  0x2d   : > { %1634 = vmatpush3.bf16.msra.mxu1 %v1789_v31  ;;  %1613 = vmatprep.subr.bf16.mxu0 %v1790_v32  ;;  %v1849_v31 = vld [vmem:[%s1944_s21 + $0x298] sm:$0xff]   ;;  %v1850_v32 = vld [vmem:[%s1944_s21 + $0x260] sm:$0xff]  }
  0x2e   : > { %1635 = vmatprep.subr.bf16.mxu1 %v1791_v34  ;;  %v1852_v34 = vld [vmem:[%s1944_s21 + $0x2e0] sm:$0xff]  }
  0x30   : > { %1614 = vmatpush3.bf16.msra.mxu0 %v1792_v35  ;;  %v1853_v35 = vld [vmem:[%s1944_s21 + $0x2a0] sm:$0xff]  }
  0x31   : > { %1636 = vmatpush3.bf16.msra.mxu1 %v1793_v37  ;;  %1643 = vmatprep.subr.bf16.mxu0 %v1798_v40  ;;  %v1855_v37 = vld [vmem:[%s1944_s21 + $0x228] sm:$0xff]   ;;  %v1858_v40 = vld [vmem:[%s1944_s21 + $0x270] sm:$0xff]  }
  0x32   : > { %1665 = vmatprep.subr.bf16.mxu1 %v1800_v43  ;;  %v1861_v43 = vld [vmem:[%s1944_s21 + $0x2b0] sm:$0xff]  }
  0x33   : > { %1155 = vmatmul.mubr.bf16.vlgmr.msra.gmra.mrb[0].mxu0 %v1471_v38  ;;  %v1856_v38 = vld [vmem:[%s1944_s21 + $0x2e8] sm:$0xff]  }
  0x34   : > { %1195 = vmatmul.mubr.bf16.vlgmr.msra.gmra.mrb[0].mxu1 %v1473_v39  ;;  %1644 = vmatpush3.bf16.msra.mxu0 %v1799_v41  ;;  %v1857_v39 = vld [vmem:[%s1944_s21 + $0x2a8] sm:$0xff]   ;;  %v1859_v41 = vld [vmem:[%s1944_s21 + $0x230] sm:$0xff]  }
  0x35   : > { %1234 = vmatprep.mubr.bf16.mxu0 %v1476_v42  ;;  %1666 = vmatpush3.bf16.msra.mxu1 %v1801_v44  ;;  %v1860_v42 = vld [vmem:[%s1944_s21 + $0x2f0] sm:$0xff]   ;;  %v1862_v44 = vld [vmem:[%s1944_s21 + $0x278] sm:$0xff]  }
  0x36   : > { %1645 = vmatprep.subr.bf16.mxu0 %v1802_v46  ;;  %1274 = vmatprep.mubr.bf16.mxu1 %v1478_v45  ;;  %v1863_v45 = vld [vmem:[%s1944_s21 + $0x238] sm:$0xff]  }
  0x37   : > { %1667 = vmatprep.subr.bf16.mxu1 %v1804_v48  ;;  %v1864_v46 = vld [vmem:[%s1944_s21 + $0x2f8] sm:$0xff]  }
  0x38   : > { %1646 = vmatpush3.bf16.msra.mxu0 %v1803_v47  ;;  %v1479_v47 = vcombine.low %v2028_v7, %v2028_v7  ;;  %v1867_v48 = vld [vmem:[%s1944_s21 + $0x2b8] sm:$0xff]  }
  0x39   : > { %1668 = vmatpush3.bf16.msra.mxu1 %v1805_v49  ;;  %1647 = vmatprep.subr.bf16.mxu0 %v1806_v50  ;;  %v1868_v49 = vld [vmem:[%s1944_s21 + $0x340] sm:$0xff]   ;;  %v1481_v50 = vcombine.low %v2035_v10, %v2035_v10 }
  0x3a   : > { %1669 = vmatprep.subr.bf16.mxu1 %v1808_v52  ;;  %v1872_v52 = vld [vmem:[%s1944_s21 + $0x348] sm:$0xff]  }
  0x3c   : > { %1648 = vmatpush3.bf16.msra.mxu0 %v1807_v51  ;;  %v1871_v51 = vld [vmem:[%s1944_s21 + $0x300] sm:$0xff]  }
  0x3d   : > { %1670 = vmatpush3.bf16.msra.mxu1 %v1809_v53  ;;  %1649 = vmatprep.subr.bf16.mxu0 %v1810_v54  ;;  %v1873_v53 = vld [vmem:[%s1944_s21 + $0x308] sm:$0xff]   ;;  %v1874_v54 = vld [vmem:[%s1944_s21 + $0x350] sm:$0xff]  }
  0x3e   : > { %1671 = vmatprep.subr.bf16.mxu1 %v1812_v56  ;;  %v1876_v56 = vld [vmem:[%s1944_s21 + $0x358] sm:$0xff]  }
  0x40   : > { %1650 = vmatpush3.bf16.msra.mxu0 %v1811_v55  ;;  %v1875_v55 = vld [vmem:[%s1944_s21 + $0x310] sm:$0xff]  }
  0x41   : > { %1672 = vmatpush3.bf16.msra.mxu1 %v1813_v57  ;;  %1651 = vmatprep.subr.bf16.mxu0 %v1814_v58  ;;  %v1877_v57 = vld [vmem:[%s1944_s21 + $0x318] sm:$0xff]   ;;  %v1878_v58 = vld [vmem:[%s1944_s21 + $0x360] sm:$0xff]  }
  0x42   : > { %1673 = vmatprep.subr.bf16.mxu1 %v1816_v60  ;;  %v176_v60 = vld [vmem:[%s2112_s1 + $0x30] sm:$0xff] }
  0x44   : > { %1652 = vmatpush3.bf16.msra.mxu0 %v1815_v59  ;;  %v1879_v59 = vld [vmem:[%s1944_s21 + $0x320] sm:$0xff]  }
  0x45   : > { %1674 = vmatpush3.bf16.msra.mxu1 %v1817_v61  ;;  %1653 = vmatprep.subr.bf16.mxu0 %v1818_v62  ;;  %v1880_v61 = vld [vmem:[%s1944_s21 + $0x368] sm:$0xff]   ;;  %v1484_v62 = vcombine.high %v176_v60, %v176_v60 }
  0x46   : > { %1675 = vmatprep.subr.bf16.mxu1 %v1820_v0  ;;  %v1882_v0 = vld [vmem:[%s1944_s21 + $0x370] sm:$0xff]  }
  0x48   : > { %1654 = vmatpush3.bf16.msra.mxu0 %v1819_v63  ;;  %v1881_v63 = vld [vmem:[%s1944_s21 + $0x328] sm:$0xff]  }
  0x49   : > { %1676 = vmatpush3.bf16.msra.mxu1 %v1821_v1  ;;  %1655 = vmatprep.subr.bf16.mxu0 %v1822_v2  ;;  %v1883_v1 = vld [vmem:[%s1944_s21 + $0x330] sm:$0xff]   ;;  %v1884_v2 = vld [vmem:[%s1944_s21 + $0x378] sm:$0xff]  }
  0x4a   : > { %1677 = vmatprep.subr.bf16.mxu1 %v1824_v4  ;;  %v1483_v4 = vcombine.low %v176_v60, %v176_v60 }
  0x4c   : > { %1656 = vmatpush3.bf16.msra.mxu0 %v1823_v3  ;;  %v1885_v3 = vld [vmem:[%s1944_s21 + $0x338] sm:$0xff]  }
  0x4d   : > { %1678 = vmatpush3.bf16.msra.mxu1 %v1825_v5  ;;  %1657 = vmatprep.subr.bf16.mxu0 %v1826_v6 }
  0x4e   : > { %1679 = vmatprep.subr.bf16.mxu1 %v1828_v9 }
  0x50   : > { %1658 = vmatpush3.bf16.msra.mxu0 %v1827_v8 }
  0x51   : > { %1680 = vmatpush3.bf16.msra.mxu1 %v1831_v12  ;;  %1687 = vmatprep.subr.bf16.mxu0 %v1832_v13 }
  0x52   : > { %1709 = vmatprep.subr.bf16.mxu1 %v1836_v17 }
  0x53   : > { %1235 = vmatmul.mubr.bf16.vlgmr.msra.gmra.mrb[4].mxu0 %v1475_v11 }
  0x54   : > { %1688 = vmatpush3.bf16.msra.mxu0 %v1835_v15  ;;  %1275 = vmatmul.mubr.bf16.vlgmr.msra.gmra.mrb[4].mxu1 %v1477_v14 }
  0x55   : > { %1314 = vmatprep.mubr.bf16.mxu0 %v1480_v16  ;;  %1710 = vmatpush3.bf16.msra.mxu1 %v1837_v18 }
  0x56   : > { %1689 = vmatprep.subr.bf16.mxu0 %v1838_v20  ;;  %1354 = vmatprep.mubr.bf16.mxu1 %v1482_v19 }
  0x57   : > { %1711 = vmatprep.subr.bf16.mxu1 %v1840_v22 }
  0x58   : > { %1690 = vmatpush3.bf16.msra.mxu0 %v1839_v21 }
  0x59   : > { %1712 = vmatpush3.bf16.msra.mxu1 %v1841_v23  ;;  %1691 = vmatprep.subr.bf16.mxu0 %v1842_v24 }
  0x5a   : > { %1713 = vmatprep.subr.bf16.mxu1 %v1844_v26 }
  0x5c   : > { %1692 = vmatpush3.bf16.msra.mxu0 %v1843_v25 }
  0x5d   : > { %1714 = vmatpush3.bf16.msra.mxu1 %v1845_v27  ;;  %1693 = vmatprep.subr.bf16.mxu0 %v1846_v28 }
  0x5e   : > { %1715 = vmatprep.subr.bf16.mxu1 %v1848_v30 }
  0x60   : > { %1694 = vmatpush3.bf16.msra.mxu0 %v1847_v29 }
  0x61   : > { %1716 = vmatpush3.bf16.msra.mxu1 %v1849_v31  ;;  %1695 = vmatprep.subr.bf16.mxu0 %v1850_v32 }
  0x62   : > { %1717 = vmatprep.subr.bf16.mxu1 %v1852_v34 }
  0x64   : > { %1696 = vmatpush3.bf16.msra.mxu0 %v1851_v33 }
  0x65   : > { %1718 = vmatpush3.bf16.msra.mxu1 %v1853_v35  ;;  %1697 = vmatprep.subr.bf16.mxu0 %v1854_v36 }
  0x66   : > { %1719 = vmatprep.subr.bf16.mxu1 %v1856_v38 }
  0x68   : > { %1698 = vmatpush3.bf16.msra.mxu0 %v1855_v37 }
  0x69   : > { %1720 = vmatpush3.bf16.msra.mxu1 %v1857_v39  ;;  %1699 = vmatprep.subr.bf16.mxu0 %v1858_v40 }
  0x6a   : > { %1721 = vmatprep.subr.bf16.mxu1 %v1860_v42 }
  0x6c   : > { %1700 = vmatpush3.bf16.msra.mxu0 %v1859_v41 }
  0x6d   : > { %1722 = vmatpush3.bf16.msra.mxu1 %v1861_v43  ;;  %1701 = vmatprep.subr.bf16.mxu0 %v1862_v44 }
  0x6e   : > { %1723 = vmatprep.subr.bf16.mxu1 %v1864_v46 }
  0x70   : > { %1702 = vmatpush3.bf16.msra.mxu0 %v1863_v45 }
  0x71   : > { %1724 = vmatpush3.bf16.msra.mxu1 %v1867_v48  ;;  %1731 = vmatprep.subr.bf16.mxu0 %v1868_v49  ;;  %v1407_v48 = vld [vmem:[%s2113_s2] sm:$0xff] }
  0x73   : > { %1315 = vmatmul.mubr.bf16.vlgmr.msra.gmra.mrb[8].mxu0 %v1479_v47 }
  0x74   : > { %1732 = vmatpush3.bf16.msra.mxu0 %v1871_v51  ;;  %1355 = vmatmul.mubr.bf16.vlgmr.msra.gmra.mrb[8].mxu1 %v1481_v50 }
  0x75   : > { %1733 = vmatprep.subr.bf16.mxu0 %v1872_v52  ;;  %1394 = vmatprep.mubr.bf16.mxu0 %v1484_v62 }
  0x78   : > { %1734 = vmatpush3.bf16.msra.mxu0 %v1873_v53 }
  0x79   : > { %1735 = vmatprep.subr.bf16.mxu0 %v1874_v54 }
  0x7c   : > { %1736 = vmatpush3.bf16.msra.mxu0 %v1875_v55 }
  0x7d   : > { %1737 = vmatprep.subr.bf16.mxu0 %v1876_v56 }
  0x80   : > { %1738 = vmatpush3.bf16.msra.mxu0 %v1877_v57 }
  0x81   : > { %1739 = vmatprep.subr.bf16.mxu0 %v1878_v58 }
  0x84   : > { %1740 = vmatpush3.bf16.msra.mxu0 %v1879_v59 }
  0x85   : > { %1741 = vmatprep.subr.bf16.mxu0 %v1880_v61 }
  0x88   : > { %1742 = vmatpush3.bf16.msra.mxu0 %v1881_v63 }
  0x89   : > { %1743 = vmatprep.subr.bf16.mxu0 %v1882_v0 }
  0x8c   : > { %1744 = vmatpush3.bf16.msra.mxu0 %v1883_v1 }
  0x8d   : > { %1745 = vmatprep.subr.bf16.mxu0 %v1884_v2 }
  0x90   : > { %1746 = vmatpush3.bf16.msra.mxu0 %v1885_v3 }
  0x93   : > { %1395 = vmatmul.mubr.bf16.vlgmr.msra.gmra.mrb[12].mxu0 %v1483_v4 }
 0x106   : > { %v1615_v5 = vpop.f32.mrb[0].mxu0 }
 0x107   : > { %v1637_v6 = vpop.f32.mrb[0].mxu1  ;;  %v1616_v7 = vpop.f32.mrb[1].mxu0 }
 0x108   : > { %v1617_v8 = vadd.f32 %v1616_v7, %v1615_v5  ;;  %v1638_v9 = vpop.f32.mrb[1].mxu1  ;;  %v1618_v10 = vpop.f32.mrb[2].mxu0 }
 0x109   : > { %v1639_v11 = vadd.f32 %v1638_v9, %v1637_v6  ;;  %v1619_v12 = vpop.f32.mrb[3].mxu0  ;;  %v1640_v13 = vpop.f32.mrb[2].mxu1 }
 0x10a   : > { %v1641_v14 = vpop.f32.mrb[3].mxu1 }
 0x10b   : > { %v1197_v15 = vadd.f32 %v1639_v11, %v1617_v8 }
 0x126   : > { %v1659_v16 = vpop.f32.mrb[4].mxu0 }
 0x127   : > { %v1660_v17 = vpop.f32.mrb[5].mxu0  ;;  %v1681_v20 = vpop.f32.mrb[4].mxu1 }
 0x128   : > { %v1661_v18 = vadd.f32 %v1660_v17, %v1659_v16  ;;  %v1662_v19 = vpop.f32.mrb[6].mxu0  ;;  %v1682_v22 = vpop.f32.mrb[5].mxu1 }
 0x129   : > { %v1663_v21 = vpop.f32.mrb[7].mxu0  ;;  %v1683_v24 = vadd.f32 %v1682_v22, %v1681_v20  ;;  %v1684_v25 = vpop.f32.mrb[6].mxu1 }
 0x12a   : > { %v1237_v23 = vadd.f32 %v1661_v18, %v1197_v15  ;;  %v1685_v26 = vpop.f32.mrb[7].mxu1 }
 0x12c   : > { %v1277_v27 = vadd.f32 %v1683_v24, %v1237_v23 }
 0x146   : > { %v1703_v28 = vpop.f32.mrb[8].mxu0 }
 0x147   : > { %v1704_v29 = vpop.f32.mrb[9].mxu0  ;;  %v1725_v32 = vpop.f32.mrb[8].mxu1 }
 0x148   : > { %v1705_v30 = vadd.f32 %v1704_v29, %v1703_v28  ;;  %v1706_v31 = vpop.f32.mrb[10].mxu0  ;;  %v1726_v34 = vpop.f32.mrb[9].mxu1 }
 0x149   : > { %v1707_v33 = vpop.f32.mrb[11].mxu0  ;;  %v1727_v36 = vadd.f32 %v1726_v34, %v1725_v32  ;;  %v1728_v37 = vpop.f32.mrb[10].mxu1 }
 0x14a   : > { %v1317_v35 = vadd.f32 %v1705_v30, %v1277_v27  ;;  %v1729_v38 = vpop.f32.mrb[11].mxu1 }
 0x14c   : > { %v1357_v39 = vadd.f32 %v1727_v36, %v1317_v35 }
 0x166   : > { %v1747_v40 = vpop.f32.mrb[12].mxu0 }
 0x167   : > { %v1748_v41 = vpop.f32.mrb[13].mxu0 }
 0x168   : > { %v1749_v42 = vadd.f32 %v1748_v41, %v1747_v40  ;;  %v1750_v43 = vpop.f32.mrb[14].mxu0 }
 0x169   : > { %v1751_v44 = vpop.f32.mrb[15].mxu0 }
 0x16a   : > { %v1397_v45 = vadd.f32 %v1749_v42, %v1357_v39 }
 0x16c   : > { %v1403_v46 = vsel %vm1402_vm0, %v1397_v45, 0.0 }
 0x16d   : > { %1404 = vadd.xlane.f32.xlu0 %v1403_v46 }
 0x1fa   : > { %v1405_v47 = vpop.xlane.xlu0 %1404 }
 0x1fb   : > { %v1406_v49 = vmul.f32 0.015625, %v1405_v47 }
 0x1fd   : > { %v1408_v50 = vadd.f32 %v1407_v48, %v1406_v49 }
 0x1ff   : > { %1410 = vst.msk [vmem:[%s168_s10] sm:$0xff] %vm1409_vm1, %v1408_v50 }
 0x200 PF: > { %s13_s12 = sadd.s32 1, %s1894_s12  }
 0x201   : > { %p10_p4 = scmp.ge.s32.totalorder %s13_s12, 4  }
 0x203   :  { %12 = sbr.rel (!%p10_p4) target bundleno = 1 (0x1), region = 62 }

</bundles_post_ra>
